<compile_context>
chip_gen: v6e
topology: v6e:2x2x1
jax: 0.10.0
libtpu: 0.0.40
codegen_flags: <defaults>
</compile_context>

<pallas_src>
import functools

import jax
import jax.numpy as jnp
from jax.experimental import pallas as pl
from jax.experimental.pallas import tpu as pltpu

_LANES = 128
_SUBLANES = 8
_MAX_TILE_ROWS = 2048      # (2048, 128) f32 = 1 MiB per input per pipeline buffer
_CHUNK_ROWS = 256          # in-kernel compute chunk (bounds live vector values)
_EPS = 2.220446049250313e-16   # np.finfo(float).eps


def _round_up(x, m):
    return ((x + m - 1) // m) * m


def _nse_sums_kernel(shift_ref, yt_ref, yp_ref, out_ref, acc_ref, *,
                     n_elems, tile_rows, chunk_rows, k_steps):
    """Accumulate blocked partial sums for the NSE loss.

    acc_ref is a (4, 8, 128) f32 VMEM accumulator holding, over valid elements:
      [0] sum((y_true - y_pred)^2)
      [1] sum(y_true - shift)
      [2] sum((y_true - shift)^2)
      [3] count of valid elements
    valid = element index < n_elems  AND  ~isnan(y_pred).
    The accumulator is flushed to out[p] on the last k step.
    """
    p = pl.program_id(0)
    k = pl.program_id(1)

    @pl.when(k == 0)
    def _init():
        acc_ref[...] = jnp.zeros_like(acc_ref)

    shift = shift_ref[0]                               # f32 scalar from SMEM
    tile_base = (p * k_steps + k) * (tile_rows * _LANES)

    # Hoisted out of the chunk loop (JAX does not CSE broadcast_in_dim).
    row_ids = jax.lax.broadcasted_iota(jnp.int32, (chunk_rows, _LANES), 0)
    lane_ids = jax.lax.broadcasted_iota(jnp.int32, (chunk_rows, _LANES), 1)
    off_in_chunk = row_ids * _LANES + lane_ids

    n_chunks = tile_rows // chunk_rows
    zero = jnp.float32(0.0)
    one = jnp.float32(1.0)

    @pl.loop(0, n_chunks)
    def _chunk(c):
        r0 = pl.multiple_of(c * chunk_rows, chunk_rows)
        yt = yt_ref[pl.ds(r0, chunk_rows), :].astype(jnp.float32)
        yp = yp_ref[pl.ds(r0, chunk_rows), :].astype(jnp.float32)

        elem_idx = tile_base + r0 * _LANES + off_in_chunk
        valid = (elem_idx < n_elems) & jnp.logical_not(jnp.isnan(yp))

        diff = yt - yp
        dev = yt - shift
        sq_err = jnp.where(valid, diff * diff, zero)
        dev_v = jnp.where(valid, dev, zero)
        dev_sq = jnp.where(valid, dev * dev, zero)
        cnt = jnp.where(valid, one, zero)

        def _blk(x):
            # (chunk_rows,128) -> (chunk_rows//8, 8, 128) -> sum axis 0:
            # pure VPU adds, no cross-lane/sublane reduce per step.
            return jnp.sum(
                x.reshape(chunk_rows // _SUBLANES, _SUBLANES, _LANES), axis=0)

        acc_ref[0] = acc_ref[0] + _blk(sq_err)
        acc_ref[1] = acc_ref[1] + _blk(dev_v)
        acc_ref[2] = acc_ref[2] + _blk(dev_sq)
        acc_ref[3] = acc_ref[3] + _blk(cnt)

    @pl.when(k == k_steps - 1)
    def _finalize():
        out_ref[0] = acc_ref[...]


def nse_loss(y_true, y_pred, y_mean=None, eps=_EPS):
    """Pallas implementation of NSEloss.forward. Returns a scalar f32."""
    y_true = jnp.asarray(y_true)
    y_pred = jnp.asarray(y_pred)
    if not jnp.issubdtype(y_true.dtype, jnp.floating):
        y_true = y_true.astype(jnp.float32)
    if not jnp.issubdtype(y_pred.dtype, jnp.floating):
        y_pred = y_pred.astype(jnp.float32)

    n = y_true.size
    if n == 0:
        return jnp.float32(jnp.nan)

    flat_t = y_true.reshape(-1)
    flat_p = y_pred.reshape(-1)

    # Cheap numerical shift (mean of the first <=1024 y_true values) so the
    # single-pass sum(d^2) - sum(d)^2/n denominator has no bad cancellation
    # even when the data has a large common offset.
    head_mean = jnp.mean(flat_t[: min(n, 1024)].astype(jnp.float32))
    shift = jnp.where(jnp.isfinite(head_mean), head_mean, jnp.float32(0.0))
    shift_arr = shift.reshape(1)

    # --- tiling: big lane-dense tiles, chunked compute, optional 2-way split.
    rows = pl.cdiv(n, _LANES)
    if rows <= _CHUNK_ROWS:
        tile_rows = _round_up(rows, _SUBLANES)
        chunk_rows = tile_rows
    else:
        tile_rows = min(_MAX_TILE_ROWS, _round_up(rows, _CHUNK_ROWS))
        chunk_rows = _CHUNK_ROWS
    total_tiles = pl.cdiv(rows, tile_rows)
    num_splits = 2 if total_tiles >= 2 else 1   # 2 TCs on v7x; harmless on v5e/v6e
    k_steps = pl.cdiv(total_tiles, num_splits)
    rows_padded = num_splits * k_steps * tile_rows

    total = rows_padded * _LANES
    if total != n:                 # conditional: no pad copy when already aligned
        flat_t = jnp.pad(flat_t, (0, total - n))
        flat_p = jnp.pad(flat_p, (0, total - n))
    t2 = flat_t.reshape(rows_padded, _LANES)
    p2 = flat_p.reshape(rows_padded, _LANES)

    kernel = functools.partial(_nse_sums_kernel, n_elems=n, tile_rows=tile_rows,
                               chunk_rows=chunk_rows, k_steps=k_steps)

    tile_spec = pl.BlockSpec((tile_rows, _LANES),
                             lambda pp, kk: (pp * k_steps + kk, 0))
    smem_spec = pl.BlockSpec(memory_space=pltpu.MemorySpace.SMEM)
    out_spec = pl.BlockSpec((1, 4, _SUBLANES, _LANES),
                            lambda pp, kk: (pp, 0, 0, 0))

    sums = pl.pallas_call(
        kernel,
        out_shape=jax.ShapeDtypeStruct((num_splits, 4, _SUBLANES, _LANES),
                                       jnp.float32),
        grid_spec=pltpu.PrefetchScalarGridSpec(
            num_scalar_prefetch=0,
            grid=(num_splits, k_steps),
            in_specs=[smem_spec, tile_spec, tile_spec],
            out_specs=out_spec,
            scratch_shapes=[pltpu.VMEM((4, _SUBLANES, _LANES), jnp.float32)],
        ),
        compiler_params=pltpu.CompilerParams(
            dimension_semantics=("parallel", "arbitrary")),
    )(shift_arr, t2, p2)

    totals = jnp.sum(sums, axis=(0, 2, 3))      # (4,) tiny XLA reduce
    sum_sq_err = totals[0]
    sum_dev = totals[1]
    sum_dev_sq = totals[2]
    count = totals[3]

    if y_mean is None:
        mean_dev = sum_dev / count               # mean(y_true_valid) - shift
    else:
        mean_dev = jnp.asarray(y_mean, jnp.float32) - shift

    # sum((y_true - y_mean)^2) = sum(dev^2) - 2*mean_dev*sum(dev) + count*mean_dev^2
    denominator = (sum_dev_sq - 2.0 * mean_dev * sum_dev
                   + count * mean_dev * mean_dev + jnp.float32(eps))
    return sum_sq_err / denominator - jnp.float32(1.0)


if __name__ == "__main__":
    key = jax.random.PRNGKey(0)
    k1, k2, k3, k4 = jax.random.split(key, 4)

    def reference(yt, yp, y_mean=None, eps=_EPS):
        valid = ~jnp.isnan(yp)
        yt = jnp.asarray(yt, jnp.float32)
        yp = jnp.asarray(yp, jnp.float32)
        cnt = jnp.sum(valid)
        mean = (jnp.sum(jnp.where(valid, yt, 0.0)) / cnt
                if y_mean is None else jnp.float32(y_mean))
        num = jnp.sum(jnp.where(valid, jnp.square(yt - yp), 0.0))
        den = jnp.sum(jnp.where(valid, jnp.square(yt - mean), 0.0)) + eps
        return num / den - 1.0

    # --- test 1: small (batch=2, seq=500), unaligned size, NaNs in y_pred -----
    shape1 = (2, 500)
    yt1 = 3.0 + jax.random.normal(k1, shape1, dtype=jnp.float32)
    yp1 = yt1 + 0.5 * jax.random.normal(k2, shape1, dtype=jnp.float32)
    yp1 = yp1.at[0, 3].set(jnp.nan).at[1, 77].set(jnp.nan)

    loss1 = jax.block_until_ready(nse_loss(yt1, yp1))
    ref1 = reference(yt1, yp1)
    assert jnp.allclose(loss1, ref1, rtol=2e-4, atol=1e-5), (loss1, ref1)

    # --- test 2: larger aligned size -> exercises (2048,128) tiles, the
    #     2-way "parallel" split (v7x) and the no-padding fast path ------------
    shape2 = (4, 2048, 128)
    yt2 = 3.0 + jax.random.normal(k3, shape2, dtype=jnp.float32)
    yp2 = yt2 + 0.5 * jax.random.normal(k4, shape2, dtype=jnp.float32)
    yp2 = yp2.at[1, 10, 5].set(jnp.nan)

    loss2 = jax.block_until_ready(nse_loss(yt2, yp2))
    ref2 = reference(yt2, yp2)
    assert jnp.allclose(loss2, ref2, rtol=2e-4, atol=1e-5), (loss2, ref2)

    # --- test 3: explicit y_mean path -----------------------------------------
    loss3 = jax.block_until_ready(nse_loss(yt1, yp1, y_mean=3.0))
    ref3 = reference(yt1, yp1, y_mean=3.0)
    assert jnp.allclose(loss3, ref3, rtol=2e-4, atol=1e-5), (loss3, ref3)

    print("KERNEL_OK")
</pallas_src>

<mosaic_0001>
module attributes {stable_mosaic.version = 11 : i64} {
  func.func @_nse_sums_kernel(%arg0: i32, %arg1: i32, %arg2: memref<1xf32, #tpu.memory_space<smem>>, %arg3: memref<8x128xf32, #tpu.memory_space<vmem>>, %arg4: memref<8x128xf32, #tpu.memory_space<vmem>>, %arg5: memref<1x4x8x128xf32, #tpu.memory_space<vmem>>, %arg6: memref<4x8x128xf32, #tpu.memory_space<vmem>>) attributes {dimension_semantics = [#tpu.dimension_semantics<parallel>, #tpu.dimension_semantics<arbitrary>], iteration_bounds = array<i64: 1, 1>, scalar_prefetch = 0 : i64, scratch_operands = 1 : i64, tpu.core_type = #tpu.core_type<tc>, window_params = [{transform_indices = @transform_0, window_bounds = array<i64: 1>}, {transform_indices = @transform_1, window_bounds = array<i64: 8, 128>}, {transform_indices = @transform_2, window_bounds = array<i64: 8, 128>}, {transform_indices = @transform_3, window_bounds = array<i64: 1, 4, 8, 128>}]} {
    %c0_i32 = arith.constant 0 : i32
    %0 = arith.cmpi eq, %arg1, %c0_i32 : i32
    %1 = arith.extui %0 : i1 to i32
    %c0_i32_0 = arith.constant 0 : i32
    %2 = arith.cmpi ne, %1, %c0_i32_0 : i32
    scf.if %2 {
      %cst_37 = arith.constant 0.000000e+00 : f32
      %78 = vector.broadcast %cst_37 : f32 to vector<4x8x128xf32>
      %c0_38 = arith.constant 0 : index
      %c0_39 = arith.constant 0 : index
      %c0_40 = arith.constant 0 : index
      %79 = vector.load %arg6[%c0_38, %c0_39, %c0_40] : memref<4x8x128xf32, #tpu.memory_space<vmem>>, vector<4x8x128xf32>
      tpu.vector_store %arg6[%c0_38, %c0_39, %c0_40], %78 {strides = array<i32>} : memref<4x8x128xf32, #tpu.memory_space<vmem>>, vector<4x8x128xf32>,
    } else {
    }
    %c0 = arith.constant 0 : index
    %3 = memref.load %arg2[%c0] : memref<1xf32, #tpu.memory_space<smem>>
    %c1_i32 = arith.constant 1 : i32
    %4 = arith.muli %arg0, %c1_i32 : i32
    %5 = arith.addi %4, %arg1 : i32
    %c1024_i32 = arith.constant 1024 : i32
    %6 = arith.muli %5, %c1024_i32 : i32
    %7 = tpu.iota {dimensions = array<i32: 0>} : vector<8x128xi32>
    %8 = tpu.iota {dimensions = array<i32: 1>} : vector<8x128xi32>
    %c128_i32 = arith.constant 128 : i32
    %9 = vector.broadcast %c128_i32 : i32 to vector<8x128xi32>
    %10 = arith.muli %7, %9 : vector<8x128xi32>
    %11 = arith.addi %10, %8 : vector<8x128xi32>
    %cst = arith.constant 0.000000e+00 : f32
    %cst_1 = arith.constant 1.000000e+00 : f32
    %c0_i32_2 = arith.constant 0 : i32
    %c1_i32_3 = arith.constant 1 : i32
    %12 = arith.muli %c0_i32_2, %c1_i32_3 : i32
    %c0_i32_4 = arith.constant 0 : i32
    %13 = arith.addi %c0_i32_4, %12 : i32
    %c8_i32 = arith.constant 8 : i32
    %14 = arith.muli %13, %c8_i32 : i32
    %15 = tpu.assume_multiple %14, 8 : i32
    %16 = arith.index_cast %15 : i32 to index
    %c0_5 = arith.constant 0 : index
    %17 = vector.load %arg3[%16, %c0_5] : memref<8x128xf32, #tpu.memory_space<vmem>>, vector<8x128xf32>
    %18 = arith.index_cast %15 : i32 to index
    %c0_6 = arith.constant 0 : index
    %19 = vector.load %arg4[%18, %c0_6] : memref<8x128xf32, #tpu.memory_space<vmem>>, vector<8x128xf32>
    %c128_i32_7 = arith.constant 128 : i32
    %20 = arith.muli %15, %c128_i32_7 : i32
    %21 = arith.addi %6, %20 : i32
    %22 = vector.broadcast %21 : i32 to vector<8x128xi32>
    %23 = arith.addi %22, %11 : vector<8x128xi32>
    %c1000_i32 = arith.constant 1000 : i32
    %24 = vector.broadcast %c1000_i32 : i32 to vector<8x128xi32>
    %25 = arith.cmpi slt, %23, %24 : vector<8x128xi32>
    %26 = arith.cmpf one, %19, %19 : vector<8x128xf32>
    %cst_8 = arith.constant dense<true> : vector<8x128xi1>
    %27 = arith.xori %26, %cst_8 : vector<8x128xi1>
    %28 = arith.andi %25, %27 : vector<8x128xi1>
    %29 = arith.subf %17, %19 : vector<8x128xf32>
    %30 = vector.broadcast %3 : f32 to vector<8x128xf32>
    %31 = arith.subf %17, %30 : vector<8x128xf32>
    %32 = arith.mulf %29, %29 : vector<8x128xf32>
    %33 = vector.broadcast %cst : f32 to vector<8x128xf32>
    %34 = arith.select %28, %32, %33 : vector<8x128xi1>, vector<8x128xf32>
    %35 = vector.broadcast %cst : f32 to vector<8x128xf32>
    %36 = arith.select %28, %31, %35 : vector<8x128xi1>, vector<8x128xf32>
    %37 = arith.mulf %31, %31 : vector<8x128xf32>
    %38 = vector.broadcast %cst : f32 to vector<8x128xf32>
    %39 = arith.select %28, %37, %38 : vector<8x128xi1>, vector<8x128xf32>
    %40 = vector.broadcast %cst_1 : f32 to vector<8x128xf32>
    %41 = vector.broadcast %cst : f32 to vector<8x128xf32>
    %42 = arith.select %28, %40, %41 : vector<8x128xi1>, vector<8x128xf32>
    %c0_9 = arith.constant 0 : index
    %c0_10 = arith.constant 0 : index
    %c0_11 = arith.constant 0 : index
    %43 = vector.load %arg6[%c0_9, %c0_10, %c0_11] : memref<4x8x128xf32, #tpu.memory_space<vmem>>, vector<1x8x128xf32>
    %44 = vector.shape_cast %43 : vector<1x8x128xf32> to vector<8x128xf32>
    %45 = vector.shape_cast %34 : vector<8x128xf32> to vector<1x8x128xf32>
    %cst_12 = arith.constant dense<0.000000e+00> : vector<8x128xf32>
    %46 = vector.multi_reduction <add>, %45, %cst_12 [0] : vector<1x8x128xf32> to vector<8x128xf32>
    %47 = arith.addf %44, %46 : vector<8x128xf32>
    %c0_13 = arith.constant 0 : index
    %c0_14 = arith.constant 0 : index
    %c0_15 = arith.constant 0 : index
    %48 = vector.load %arg6[%c0_13, %c0_14, %c0_15] : memref<4x8x128xf32, #tpu.memory_space<vmem>>, vector<1x8x128xf32>
    %49 = vector.shape_cast %48 : vector<1x8x128xf32> to vector<8x128xf32>
    %50 = vector.shape_cast %47 : vector<8x128xf32> to vector<1x8x128xf32>
    tpu.vector_store %arg6[%c0_13, %c0_14, %c0_15], %50 {strides = array<i32>} : memref<4x8x128xf32, #tpu.memory_space<vmem>>, vector<1x8x128xf32>,
    %c1 = arith.constant 1 : index
    %c0_16 = arith.constant 0 : index
    %c0_17 = arith.constant 0 : index
    %51 = vector.load %arg6[%c1, %c0_16, %c0_17] : memref<4x8x128xf32, #tpu.memory_space<vmem>>, vector<1x8x128xf32>
    %52 = vector.shape_cast %51 : vector<1x8x128xf32> to vector<8x128xf32>
    %53 = vector.shape_cast %36 : vector<8x128xf32> to vector<1x8x128xf32>
    %cst_18 = arith.constant dense<0.000000e+00> : vector<8x128xf32>
    %54 = vector.multi_reduction <add>, %53, %cst_18 [0] : vector<1x8x128xf32> to vector<8x128xf32>
    %55 = arith.addf %52, %54 : vector<8x128xf32>
    %c1_19 = arith.constant 1 : index
    %c0_20 = arith.constant 0 : index
    %c0_21 = arith.constant 0 : index
    %56 = vector.load %arg6[%c1_19, %c0_20, %c0_21] : memref<4x8x128xf32, #tpu.memory_space<vmem>>, vector<1x8x128xf32>
    %57 = vector.shape_cast %56 : vector<1x8x128xf32> to vector<8x128xf32>
    %58 = vector.shape_cast %55 : vector<8x128xf32> to vector<1x8x128xf32>
    tpu.vector_store %arg6[%c1_19, %c0_20, %c0_21], %58 {strides = array<i32>} : memref<4x8x128xf32, #tpu.memory_space<vmem>>, vector<1x8x128xf32>,
    %c2 = arith.constant 2 : index
    %c0_22 = arith.constant 0 : index
    %c0_23 = arith.constant 0 : index
    %59 = vector.load %arg6[%c2, %c0_22, %c0_23] : memref<4x8x128xf32, #tpu.memory_space<vmem>>, vector<1x8x128xf32>
    %60 = vector.shape_cast %59 : vector<1x8x128xf32> to vector<8x128xf32>
    %61 = vector.shape_cast %39 : vector<8x128xf32> to vector<1x8x128xf32>
    %cst_24 = arith.constant dense<0.000000e+00> : vector<8x128xf32>
    %62 = vector.multi_reduction <add>, %61, %cst_24 [0] : vector<1x8x128xf32> to vector<8x128xf32>
    %63 = arith.addf %60, %62 : vector<8x128xf32>
    %c2_25 = arith.constant 2 : index
    %c0_26 = arith.constant 0 : index
    %c0_27 = arith.constant 0 : index
    %64 = vector.load %arg6[%c2_25, %c0_26, %c0_27] : memref<4x8x128xf32, #tpu.memory_space<vmem>>, vector<1x8x128xf32>
    %65 = vector.shape_cast %64 : vector<1x8x128xf32> to vector<8x128xf32>
    %66 = vector.shape_cast %63 : vector<8x128xf32> to vector<1x8x128xf32>
    tpu.vector_store %arg6[%c2_25, %c0_26, %c0_27], %66 {strides = array<i32>} : memref<4x8x128xf32, #tpu.memory_space<vmem>>, vector<1x8x128xf32>,
    %c3 = arith.constant 3 : index
    %c0_28 = arith.constant 0 : index
    %c0_29 = arith.constant 0 : index
    %67 = vector.load %arg6[%c3, %c0_28, %c0_29] : memref<4x8x128xf32, #tpu.memory_space<vmem>>, vector<1x8x128xf32>
    %68 = vector.shape_cast %67 : vector<1x8x128xf32> to vector<8x128xf32>
    %69 = vector.shape_cast %42 : vector<8x128xf32> to vector<1x8x128xf32>
    %cst_30 = arith.constant dense<0.000000e+00> : vector<8x128xf32>
    %70 = vector.multi_reduction <add>, %69, %cst_30 [0] : vector<1x8x128xf32> to vector<8x128xf32>
    %71 = arith.addf %68, %70 : vector<8x128xf32>
    %c3_31 = arith.constant 3 : index
    %c0_32 = arith.constant 0 : index
    %c0_33 = arith.constant 0 : index
    %72 = vector.load %arg6[%c3_31, %c0_32, %c0_33] : memref<4x8x128xf32, #tpu.memory_space<vmem>>, vector<1x8x128xf32>
    %73 = vector.shape_cast %72 : vector<1x8x128xf32> to vector<8x128xf32>
    %74 = vector.shape_cast %71 : vector<8x128xf32> to vector<1x8x128xf32>
    tpu.vector_store %arg6[%c3_31, %c0_32, %c0_33], %74 {strides = array<i32>} : memref<4x8x128xf32, #tpu.memory_space<vmem>>, vector<1x8x128xf32>,
    %c1_i32_34 = arith.constant 1 : i32
    %c0_i32_35 = arith.constant 0 : i32
    %75 = arith.cmpi eq, %arg1, %c0_i32_35 : i32
    %76 = arith.extui %75 : i1 to i32
    %c0_i32_36 = arith.constant 0 : i32
    %77 = arith.cmpi ne, %76, %c0_i32_36 : i32
    scf.if %77 {
      %c0_37 = arith.constant 0 : index
      %c0_38 = arith.constant 0 : index
      %c0_39 = arith.constant 0 : index
      %78 = vector.load %arg6[%c0_37, %c0_38, %c0_39] : memref<4x8x128xf32, #tpu.memory_space<vmem>>, vector<4x8x128xf32>
      %c0_40 = arith.constant 0 : index
      %c0_41 = arith.constant 0 : index
      %c0_42 = arith.constant 0 : index
      %c0_43 = arith.constant 0 : index
      %79 = vector.load %arg5[%c0_40, %c0_41, %c0_42, %c0_43] : memref<1x4x8x128xf32, #tpu.memory_space<vmem>>, vector<1x4x8x128xf32>
      %80 = vector.shape_cast %79 : vector<1x4x8x128xf32> to vector<4x8x128xf32>
      %81 = vector.shape_cast %78 : vector<4x8x128xf32> to vector<1x4x8x128xf32>
      tpu.vector_store %arg5[%c0_40, %c0_41, %c0_42, %c0_43], %81 {strides = array<i32>} : memref<1x4x8x128xf32, #tpu.memory_space<vmem>>, vector<1x4x8x128xf32>,
    } else {
    }
    return
  }
  func.func @transform_0(%arg0: i32, %arg1: i32) -> i32 {
    %c0_i32 = arith.constant 0 : i32
    %c0_i32_0 = arith.constant 0 : i32
    return %c0_i32 : i32
  }
  func.func @transform_1(%arg0: i32, %arg1: i32) -> (i32, i32) {
    %c1_i32 = arith.constant 1 : i32
    %0 = arith.muli %arg0, %c1_i32 : i32
    %1 = arith.addi %0, %arg1 : i32
    %c0_i32 = arith.constant 0 : i32
    %c0_i32_0 = arith.constant 0 : i32
    return %1, %c0_i32 : i32, i32
  }
  func.func @transform_2(%arg0: i32, %arg1: i32) -> (i32, i32) {
    %c1_i32 = arith.constant 1 : i32
    %0 = arith.muli %arg0, %c1_i32 : i32
    %1 = arith.addi %0, %arg1 : i32
    %c0_i32 = arith.constant 0 : i32
    %c0_i32_0 = arith.constant 0 : i32
    return %1, %c0_i32 : i32, i32
  }
  func.func @transform_3(%arg0: i32, %arg1: i32) -> (i32, i32, i32, i32) {
    %c0_i32 = arith.constant 0 : i32
    %c0_i32_0 = arith.constant 0 : i32
    %c0_i32_1 = arith.constant 0 : i32
    %c0_i32_2 = arith.constant 0 : i32
    return %arg0, %c0_i32, %c0_i32_0, %c0_i32_1 : i32, i32, i32, i32
  }
}

</mosaic_0001>

<bundles_post_ra>
// kernel: tpu_custom_call.1
= control target key start
LH: loop header
LB: loop body
LE: loop exit
PB: predicated region body
PF: predicated region fallthrough
CT: control target
= control target key end

     0   :  { %9 = vsyncpa [#allocation5], 0  ;;  %s244_s0 = inlined_call_operand.<no memory space> [shape: f32[1], index: 0, kind: input, shape index: {}]   ;;  %s245_s1 = inlined_call_operand.hbm [shape: f32[8,128], index: 1, kind: input, shape index: {}]   ;;  %s246_s2 = inlined_call_operand.hbm [shape: f32[8,128], index: 2, kind: input, shape index: {}]   ;;  %s247_s3 = inlined_call_operand.hbm [shape: f32[1,4,8,128], index: 3, kind: output, shape index: {}]  }
   0x1   :  { %10 = vsyncpa [#allocation8], 0 }
   0x2   :  { %11 = vsyncpa [#allocation6], 0  ;;  %s205_s12 = smov [#allocation4]   ;;  %s206_s14 = smov [#allocation7]  }
   0x3   :  { %s23_s13 = sshll.u32 %s205_s12, 4  ;;  %s36_s15 = sshll.u32 %s206_s14, 4  ;;  %s24_s13 = int_to_ptr.vmem [resolvable:$true] %s23_s13  ;;  %s37_s15 = int_to_ptr.vmem [resolvable:$true] %s36_s15 }
   0x4   :  { %s147_s16 = scalar_lea.vmem %s24_s13, 128  ;;  %p152_p1 = scmp.lt.s32.totalorder %s24_s13, %s24_s13 }
   0x5   :  { %p148_p0 = scmp.ne.s32.totalorder %s24_s13, %s147_s16  ;;  %p153_p2 = scmp.lt.s32.totalorder %s147_s16, %s147_s16 }
   0x7   :  { %p154_p3 = por %p153_p2, %p152_p1 }
   0x9   :  { %p155_p4 = pnand %p154_p3, %p148_p0 }
   0xb   :  { %158 = shalt.err (!%p155_p4)
}
   0xc   :  { %26 = dma.hbm_to_vmem [thread:$0]  %s245_s1, 128, %s24_s13, [#allocation5]  }
   0xd   :  { %s167_s19 = scalar_lea.vmem %s37_s15, 128  ;;  %p172_p6 = scmp.lt.s32.totalorder %s37_s15, %s37_s15 }
   0xe   :  { %p168_p5 = scmp.ne.s32.totalorder %s37_s15, %s167_s19  ;;  %p173_p7 = scmp.lt.s32.totalorder %s167_s19, %s167_s19 }
  0x10   :  { %p174_p8 = por %p173_p7, %p172_p6 }
  0x12   :  { %p175_p9 = pnand %p174_p8, %p168_p5 }
  0x14   :  { %178 = shalt.err (!%p175_p9)
}
  0x15   :  { %39 = dma.hbm_to_vmem [thread:$0]  %s246_s2, 128, %s37_s15, [#allocation8]  }
  0x16   :  { %199 = dma.done.wait [#allocation5], 128  }
  0x17   :  { %200 = vsyncadd [#allocation5], 4294967168 }
  0x18   :  { %201 = dma.done.wait [#allocation8], 128  }
  0x19   :  { %202 = vsyncadd [#allocation8], 4294967168  ;;  %v59_v0 = vlaneseq  ;;  %v76_v4 = vstv %s244_s0  ;;  %v65_v6 = vld [vmem:[#allocation4] sm:$0xff]  ;;  %v66_v7 = vld [vmem:[#allocation7] sm:$0xff]  ;;  %s207_s2 = smov [#allocation9]   ;;  %vm208_vm2 = vmmov 1  }
  0x1a   :  { %vm72_vm1 = vcmp.ne.f32.partialorder %v66_v7, %v66_v7  ;;  %v75_v8 = vsub.f32 %v65_v6, %v66_v7  ;;  %v77_v9 = vsub.f32 %v65_v6, %v76_v4  ;;  %s119_s23 = sshll.u32 %s207_s2, 4  ;;  %v209_v13 = vmov 0.0   ;;  %s120_s23 = int_to_ptr.vmem [resolvable:$true] %s119_s23 }
  0x1b   :  { %v60_v1 = vshrl.u32 %v59_v0, 7  ;;  %v62_v2 = vand.u32 127, %v59_v0  ;;  %vm73_vm3 = vmxor %vm72_vm1, %vm208_vm2  ;;  %s179_s0 = scalar_lea.vmem %s120_s23, 512  ;;  %p184_p11 = scmp.lt.s32.totalorder %s120_s23, %s120_s23 }
  0x1c   :  { %v78_v10 = vmul.f32 %v75_v8, %v75_v8  ;;  %v81_v11 = vmul.f32 %v77_v9, %v77_v9  ;;  %p180_p10 = scmp.ne.s32.totalorder %s120_s23, %s179_s0  ;;  %p185_p12 = scmp.lt.s32.totalorder %s179_s0, %s179_s0 }
  0x1d   :  { %v63_v3 = vmul.u32 128, %v60_v1 }
  0x1e   :  { %p186_p13 = por %p185_p12, %p184_p11 }
  0x1f   :  { %v64_v5 = vadd.s32 %v63_v3, %v62_v2 }
  0x20   :  { %p187_p0 = pnand %p186_p13, %p180_p10 }
  0x21   :  { %vm71_vm0 = vcmp.lt.s32.totalorder %v64_v5, 1000 }
  0x22   :  { %vm74_vm4 = vmand %vm71_vm0, %vm73_vm3 }
  0x23   :  { %v80_v12 = vsel %vm74_vm4, %v77_v9, 0.0  ;;  %v83_v14 = vsel %vm74_vm4, 1.0, %v209_v13  ;;  %v79_v15 = vsel %vm74_vm4, %v78_v10, 0.0  ;;  %v82_v16 = vsel %vm74_vm4, %v81_v11, 0.0 }
  0x24   :  { %111 = vst [vmem:[#allocation9 + $0x8] sm:$0xff] %v80_v12  ;;  %113 = vst [vmem:[#allocation9 + $0x18] sm:$0xff] %v83_v14 }
  0x25   :  { %110 = vst [vmem:[#allocation9] sm:$0xff] %v79_v15  ;;  %112 = vst [vmem:[#allocation9 + $0x10] sm:$0xff] %v82_v16 }
  0x26   :  { %190 = shalt.err (!%p187_p0)
}
  0x27   :  { %s210_s24 = smov 128   ;;  %s211_s25 = smov 8  }
  0x28   :  { %125 = dma.vmem_to_hbm [thread:$0]  %s120_s23, 512, %s247_s3, [#allocation6], %s210_s24, %s210_s24, %s211_s25  }
  0x29   :  { %203 = dma.done.wait [#allocation6], 512  }
  0x2a   :  { %204 = vsyncadd [#allocation6], 4294966784 }
  0x2b   :  { %129 = vsyncpa [#allocation5], 1 }
  0x2c   :  { %130 = vsyncpa [#allocation8], 1 }
  0x2d   :  { %131 = vsyncpa [#allocation6], 1 }

</bundles_post_ra>
